<compile_context>
chip_gen: v7x
topology: tpu7x:2x2x1
jax: 0.10.0
libtpu: 0.0.40
codegen_flags: <defaults>
</compile_context>

<pallas_src>
import functools

import jax
import jax.numpy as jnp
import numpy as np
from jax.experimental import pallas as pl
from jax.experimental.pallas import tpu as pltpu

HEAD_N = 128  # lane-dense fused-head width (mean | value | comm | zero padding)


def _round_up(n, m):
    return ((n + m - 1) // m) * m


def _ppo_forward_kernel(x_ref, w1_ref, b1_ref, w2_ref, b2_ref, wh_ref, bh_ref,
                        out_ref, *, out_dim):
    x = x_ref[...]

    # feature_extractor: Linear -> ReLU -> Linear -> ReLU
    h1 = jnp.dot(x, w1_ref[...], preferred_element_type=jnp.float32) + b1_ref[...]
    h1 = jnp.maximum(h1, 0.0)
    h2 = jnp.dot(h1, w2_ref[...], preferred_element_type=jnp.float32) + b2_ref[...]
    h2 = jnp.maximum(h2, 0.0)

    # Fused heads: one lane-dense (TB, 128) matmul.
    # Column layout: [0:out_dim]=mean, [out_dim]=value, [out_dim+1:out_dim+3]=comm logits.
    head = jnp.dot(h2, wh_ref[...], preferred_element_type=jnp.float32) + bh_ref[...]

    # 2-way softmax == sigmoid of logit difference.
    c0 = out_dim + 1
    l0 = head[:, c0:c0 + 1]
    l1 = head[:, c0 + 1:c0 + 2]
    p0 = 1.0 / (1.0 + jnp.exp(l1 - l0))   # softmax([l0, l1])[0]
    p1 = 1.0 - p0

    lane = jax.lax.broadcasted_iota(jnp.int32, head.shape, 1)
    out = jnp.where(lane == c0, p0, jnp.where(lane == c0 + 1, p1, head))
    out_ref[...] = out


def ppo_forward(x, params, *, block_b=512):
    """Forward pass of LQRPPOnetworl. Returns (mean, std, value, comm_probs)."""
    B, input_dim = x.shape
    out_dim = params["wm"].shape[1]
    assert out_dim + 3 <= HEAD_N, "output_dim too large for 128-wide fused head"

    # Batch tiling: multiple of 8 sublanes, pad the batch so the grid divides evenly.
    TB = min(block_b, _round_up(B, 8))
    Bp = _round_up(B, TB)
    if Bp != B:
        x = jnp.pad(x, ((0, Bp - B), (0, 0)))
    grid = (Bp // TB,)

    w1, b1 = params["w1"], params["b1"]
    w2, b2 = params["w2"], params["b2"]
    wh, bh = params["wh"], params["bh"]

    flops = 2 * Bp * (input_dim * 64 + 64 * 64 + 64 * HEAD_N)
    bytes_accessed = (Bp * (input_dim + HEAD_N) * 4
                      + (w1.size + b1.size + w2.size + b2.size + wh.size + bh.size) * 4)
    cost = pl.CostEstimate(flops=flops, transcendentals=Bp, bytes_accessed=bytes_accessed)

    const = lambda i: (0, 0)  # weights: same block every grid step (no re-DMA)

    slab = pl.pallas_call(
        functools.partial(_ppo_forward_kernel, out_dim=out_dim),
        out_shape=jax.ShapeDtypeStruct((Bp, HEAD_N), jnp.float32),
        grid=grid,
        in_specs=[
            pl.BlockSpec((TB, input_dim), lambda i: (i, 0)),   # x tile
            pl.BlockSpec(w1.shape, const),
            pl.BlockSpec(b1.shape, const),
            pl.BlockSpec(w2.shape, const),
            pl.BlockSpec(b2.shape, const),
            pl.BlockSpec(wh.shape, const),
            pl.BlockSpec(bh.shape, const),
        ],
        out_specs=pl.BlockSpec((TB, HEAD_N), lambda i: (i, 0)),
        compiler_params=pltpu.CompilerParams(dimension_semantics=("parallel",)),
        cost_estimate=cost,
    )(x, w1, b1, w2, b2, wh, bh)

    slab = slab[:B]
    mean = slab[:, 0:out_dim]
    value = slab[:, out_dim:out_dim + 1]
    comm_probs = slab[:, out_dim + 1:out_dim + 3]
    # std = exp(log_std) broadcast over the batch (batch-invariant -> computed once here).
    std = jnp.broadcast_to(jnp.exp(params["log_std"]), (B, out_dim))
    return mean, std, value, comm_probs


def init_params(key, input_dim, output_dim):
    """Deterministic init mimicking PyTorch nn.Linear defaults (U(-1/sqrt(fan_in), ...)).

    Weights stored as (in_features, out_features), biases as (1, out_features).
    Also builds the fused, zero-padded (64, 128) head weight/bias once (not per call).
    """
    def linear(key, fan_in, fan_out):
        kw, kb = jax.random.split(key)
        bound = 1.0 / np.sqrt(fan_in)
        w = jax.random.uniform(kw, (fan_in, fan_out), jnp.float32, -bound, bound)
        b = jax.random.uniform(kb, (1, fan_out), jnp.float32, -bound, bound)
        return w, b

    k1, k2, k3, k4, k5 = jax.random.split(key, 5)
    w1, b1 = linear(k1, input_dim, 64)
    w2, b2 = linear(k2, 64, 64)
    wm, bm = linear(k3, 64, output_dim)   # actor_mean
    wc, bc = linear(k4, 64, 2)            # actor_comm
    wv, bv = linear(k5, 64, 1)            # critic
    log_std = jnp.zeros((1, output_dim), jnp.float32)

    pad = HEAD_N - (output_dim + 3)
    wh = jnp.concatenate([wm, wv, wc, jnp.zeros((64, pad), jnp.float32)], axis=1)
    bh = jnp.concatenate([bm, bv, bc, jnp.zeros((1, pad), jnp.float32)], axis=1)

    return dict(
        w1=w1, b1=b1, w2=w2, b2=b2,
        wm=wm, bm=bm, wc=wc, bc=bc, wv=wv, bv=bv,
        wh=wh, bh=bh,
        log_std=log_std,
    )


def _reference_forward(x, p):
    """Pure-JAX reference of LQRPPOnetworl.forward for verification."""
    h1 = jnp.maximum(x @ p["w1"] + p["b1"], 0.0)
    h2 = jnp.maximum(h1 @ p["w2"] + p["b2"], 0.0)
    mean = h2 @ p["wm"] + p["bm"]
    std = jnp.exp(jnp.broadcast_to(p["log_std"], mean.shape))
    value = h2 @ p["wv"] + p["bv"]
    logits = h2 @ p["wc"] + p["bc"]
    comm = jax.nn.softmax(logits, axis=-1)
    return mean, std, value, comm


def _check(x, params, **kw):
    outs = ppo_forward(x, params, **kw)
    jax.block_until_ready(outs)
    ref = _reference_forward(x, params)
    for got, want in zip(outs, ref):
        np.testing.assert_allclose(np.asarray(got), np.asarray(want), rtol=1e-5, atol=1e-5)


if __name__ == "__main__":
    key = jax.random.PRNGKey(0)
    k_param, k_x1, k_x2 = jax.random.split(key, 3)

    input_dim, output_dim = 16, 4
    params = init_params(k_param, input_dim, output_dim)

    # Small single-tile case.
    x_small = jax.random.normal(k_x1, (8, input_dim), jnp.float32)
    _check(x_small, params)

    # Multi-step grid with a ragged batch (exercises padding + pipelined batch tiles).
    x_big = jax.random.normal(k_x2, (20, input_dim), jnp.float32)
    _check(x_big, params, block_b=8)

    print("KERNEL_OK")
</pallas_src>

<mosaic_0001>
module attributes {stable_mosaic.version = 11 : i64} {
  func.func @_ppo_forward_kernel(%arg0: i32, %arg1: memref<8x16xf32, #tpu.memory_space<vmem>>, %arg2: memref<16x64xf32, #tpu.memory_space<vmem>>, %arg3: memref<1x64xf32, #tpu.memory_space<vmem>>, %arg4: memref<64x64xf32, #tpu.memory_space<vmem>>, %arg5: memref<1x64xf32, #tpu.memory_space<vmem>>, %arg6: memref<64x128xf32, #tpu.memory_space<vmem>>, %arg7: memref<1x128xf32, #tpu.memory_space<vmem>>, %arg8: memref<8x128xf32, #tpu.memory_space<vmem>>) attributes {dimension_semantics = [#tpu.dimension_semantics<parallel>], iteration_bounds = array<i64: 1>, scalar_prefetch = 0 : i64, scratch_operands = 0 : i64, tpu.core_type = #tpu.core_type<tc>, window_params = [{transform_indices = @transform_0, window_bounds = array<i64: 8, 16>}, {pipeline_mode = #tpu.pipeline_mode<synchronous>, transform_indices = @transform_1, window_bounds = array<i64: 16, 64>}, {pipeline_mode = #tpu.pipeline_mode<synchronous>, transform_indices = @transform_2, window_bounds = array<i64: 1, 64>}, {pipeline_mode = #tpu.pipeline_mode<synchronous>, transform_indices = @transform_3, window_bounds = array<i64: 64, 64>}, {pipeline_mode = #tpu.pipeline_mode<synchronous>, transform_indices = @transform_4, window_bounds = array<i64: 1, 64>}, {pipeline_mode = #tpu.pipeline_mode<synchronous>, transform_indices = @transform_5, window_bounds = array<i64: 64, 128>}, {pipeline_mode = #tpu.pipeline_mode<synchronous>, transform_indices = @transform_6, window_bounds = array<i64: 1, 128>}, {transform_indices = @transform_7, window_bounds = array<i64: 8, 128>}]} {
    %c0 = arith.constant 0 : index
    %c0_0 = arith.constant 0 : index
    %0 = vector.load %arg1[%c0, %c0_0] : memref<8x16xf32, #tpu.memory_space<vmem>>, vector<8x16xf32>
    %c0_1 = arith.constant 0 : index
    %c0_2 = arith.constant 0 : index
    %1 = vector.load %arg2[%c0_1, %c0_2] : memref<16x64xf32, #tpu.memory_space<vmem>>, vector<16x64xf32>
    %cst = arith.constant dense<0.000000e+00> : vector<8x64xf32>
    %2 = tpu.matmul %0, %1, %cst {dimension_numbers = #tpu.dot_dimension_numbers<[1], [0], [0], [1], [0, 0, 1, 1], [], []>} : vector<8x16xf32>, vector<16x64xf32>, vector<8x64xf32> -> vector<8x64xf32>
    %c0_3 = arith.constant 0 : index
    %c0_4 = arith.constant 0 : index
    %3 = vector.load %arg3[%c0_3, %c0_4] : memref<1x64xf32, #tpu.memory_space<vmem>>, vector<1x64xf32>
    %4 = vector.broadcast %3 : vector<1x64xf32> to vector<8x64xf32>
    %5 = arith.addf %2, %4 : vector<8x64xf32>
    %cst_5 = arith.constant 0.000000e+00 : f32
    %6 = vector.broadcast %cst_5 : f32 to vector<8x64xf32>
    %7 = arith.maximumf %5, %6 : vector<8x64xf32>
    %c0_6 = arith.constant 0 : index
    %c0_7 = arith.constant 0 : index
    %8 = vector.load %arg4[%c0_6, %c0_7] : memref<64x64xf32, #tpu.memory_space<vmem>>, vector<64x64xf32>
    %cst_8 = arith.constant dense<0.000000e+00> : vector<8x64xf32>
    %9 = tpu.matmul %7, %8, %cst_8 {dimension_numbers = #tpu.dot_dimension_numbers<[1], [0], [0], [1], [0, 0, 1, 1], [], []>} : vector<8x64xf32>, vector<64x64xf32>, vector<8x64xf32> -> vector<8x64xf32>
    %c0_9 = arith.constant 0 : index
    %c0_10 = arith.constant 0 : index
    %10 = vector.load %arg5[%c0_9, %c0_10] : memref<1x64xf32, #tpu.memory_space<vmem>>, vector<1x64xf32>
    %11 = vector.broadcast %10 : vector<1x64xf32> to vector<8x64xf32>
    %12 = arith.addf %9, %11 : vector<8x64xf32>
    %cst_11 = arith.constant 0.000000e+00 : f32
    %13 = vector.broadcast %cst_11 : f32 to vector<8x64xf32>
    %14 = arith.maximumf %12, %13 : vector<8x64xf32>
    %c0_12 = arith.constant 0 : index
    %c0_13 = arith.constant 0 : index
    %15 = vector.load %arg6[%c0_12, %c0_13] : memref<64x128xf32, #tpu.memory_space<vmem>>, vector<64x128xf32>
    %cst_14 = arith.constant dense<0.000000e+00> : vector<8x128xf32>
    %16 = tpu.matmul %14, %15, %cst_14 {dimension_numbers = #tpu.dot_dimension_numbers<[1], [0], [0], [1], [0, 0, 1, 1], [], []>} : vector<8x64xf32>, vector<64x128xf32>, vector<8x128xf32> -> vector<8x128xf32>
    %c0_15 = arith.constant 0 : index
    %c0_16 = arith.constant 0 : index
    %17 = vector.load %arg7[%c0_15, %c0_16] : memref<1x128xf32, #tpu.memory_space<vmem>>, vector<1x128xf32>
    %18 = vector.broadcast %17 : vector<1x128xf32> to vector<8x128xf32>
    %19 = arith.addf %16, %18 : vector<8x128xf32>
    %20 = vector.extract_strided_slice %19 {offsets = [0, 5], sizes = [8, 1], strides = [1, 1]} : vector<8x128xf32> to vector<8x1xf32>
    %21 = vector.extract_strided_slice %19 {offsets = [0, 6], sizes = [8, 1], strides = [1, 1]} : vector<8x128xf32> to vector<8x1xf32>
    %22 = arith.subf %21, %20 : vector<8x1xf32>
    %23 = math.exp %22 : vector<8x1xf32>
    %cst_17 = arith.constant 1.000000e+00 : f32
    %24 = vector.broadcast %cst_17 : f32 to vector<8x1xf32>
    %25 = arith.addf %24, %23 : vector<8x1xf32>
    %cst_18 = arith.constant 1.000000e+00 : f32
    %26 = vector.broadcast %cst_18 : f32 to vector<8x1xf32>
    %27 = arith.divf %26, %25 : vector<8x1xf32>
    %cst_19 = arith.constant 1.000000e+00 : f32
    %28 = vector.broadcast %cst_19 : f32 to vector<8x1xf32>
    %29 = arith.subf %28, %27 : vector<8x1xf32>
    %30 = tpu.iota {dimensions = array<i32: 1>} : vector<8x128xi32>
    %c5_i32 = arith.constant 5 : i32
    %31 = vector.broadcast %c5_i32 : i32 to vector<8x128xi32>
    %32 = arith.cmpi eq, %30, %31 : vector<8x128xi32>
    %c6_i32 = arith.constant 6 : i32
    %33 = vector.broadcast %c6_i32 : i32 to vector<8x128xi32>
    %34 = arith.cmpi eq, %30, %33 : vector<8x128xi32>
    %35 = vector.shape_cast %29 : vector<8x1xf32> to vector<8x1xf32>
    %36 = vector.broadcast %35 : vector<8x1xf32> to vector<8x128xf32>
    %37 = arith.select %34, %36, %19 : vector<8x128xi1>, vector<8x128xf32>
    %38 = vector.shape_cast %27 : vector<8x1xf32> to vector<8x1xf32>
    %39 = vector.broadcast %38 : vector<8x1xf32> to vector<8x128xf32>
    %40 = arith.select %32, %39, %37 : vector<8x128xi1>, vector<8x128xf32>
    %c0_20 = arith.constant 0 : index
    %c0_21 = arith.constant 0 : index
    %41 = vector.load %arg8[%c0_20, %c0_21] : memref<8x128xf32, #tpu.memory_space<vmem>>, vector<8x128xf32>
    tpu.vector_store %arg8[%c0_20, %c0_21], %40 {strides = array<i32>} : memref<8x128xf32, #tpu.memory_space<vmem>>, vector<8x128xf32>,
    return
  }
  func.func @transform_0(%arg0: i32) -> (i32, i32) {
    %c0_i32 = arith.constant 0 : i32
    %c0_i32_0 = arith.constant 0 : i32
    return %arg0, %c0_i32 : i32, i32
  }
  func.func @transform_1(%arg0: i32) -> (i32, i32) {
    %c0_i32 = arith.constant 0 : i32
    %c0_i32_0 = arith.constant 0 : i32
    %c0_i32_1 = arith.constant 0 : i32
    return %c0_i32, %c0_i32_0 : i32, i32
  }
  func.func @transform_2(%arg0: i32) -> (i32, i32) {
    %c0_i32 = arith.constant 0 : i32
    %c0_i32_0 = arith.constant 0 : i32
    %c0_i32_1 = arith.constant 0 : i32
    return %c0_i32, %c0_i32_0 : i32, i32
  }
  func.func @transform_3(%arg0: i32) -> (i32, i32) {
    %c0_i32 = arith.constant 0 : i32
    %c0_i32_0 = arith.constant 0 : i32
    %c0_i32_1 = arith.constant 0 : i32
    return %c0_i32, %c0_i32_0 : i32, i32
  }
  func.func @transform_4(%arg0: i32) -> (i32, i32) {
    %c0_i32 = arith.constant 0 : i32
    %c0_i32_0 = arith.constant 0 : i32
    %c0_i32_1 = arith.constant 0 : i32
    return %c0_i32, %c0_i32_0 : i32, i32
  }
  func.func @transform_5(%arg0: i32) -> (i32, i32) {
    %c0_i32 = arith.constant 0 : i32
    %c0_i32_0 = arith.constant 0 : i32
    %c0_i32_1 = arith.constant 0 : i32
    return %c0_i32, %c0_i32_0 : i32, i32
  }
  func.func @transform_6(%arg0: i32) -> (i32, i32) {
    %c0_i32 = arith.constant 0 : i32
    %c0_i32_0 = arith.constant 0 : i32
    %c0_i32_1 = arith.constant 0 : i32
    return %c0_i32, %c0_i32_0 : i32, i32
  }
  func.func @transform_7(%arg0: i32) -> (i32, i32) {
    %c0_i32 = arith.constant 0 : i32
    %c0_i32_0 = arith.constant 0 : i32
    return %arg0, %c0_i32 : i32, i32
  }
}

</mosaic_0001>

<bundles_post_ra>
// kernel: tpu_custom_call.1
= control target key start
LH: loop header
LB: loop body
LE: loop exit
PB: predicated region body
PF: predicated region fallthrough
CT: control target
= control target key end

     0   :  { %12 = vsyncpa [#allocation3], 0  ;;  %s756_s0 = inlined_call_operand.hbm [shape: f32[8,16], index: 0, kind: input, shape index: {}]   ;;  %s757_s1 = inlined_call_operand.hbm [shape: f32[16,64], index: 1, kind: input, shape index: {}]   ;;  %s758_s2 = inlined_call_operand.vmem [shape: f32[1,64], index: 2, kind: input, shape index: {}]   ;;  %s759_s3 = inlined_call_operand.hbm [shape: f32[64,64], index: 3, kind: input, shape index: {}]   ;;  %s760_s4 = inlined_call_operand.vmem [shape: f32[1,64], index: 4, kind: input, shape index: {}]   ;;  %s761_s5 = inlined_call_operand.hbm [shape: f32[64,128], index: 5, kind: input, shape index: {}]   ;;  %s762_s6 = inlined_call_operand.vmem [shape: f32[1,128], index: 6, kind: input, shape index: {}]   ;;  %s763_s7 = inlined_call_operand.hbm [shape: f32[8,128], index: 7, kind: output, shape index: {}]  }
   0x1   :  { %13 = vsyncpa [#allocation6], 0 }
   0x2   :  { %14 = vsyncpa [#allocation9], 0 }
   0x3   :  { %15 = vsyncpa [#allocation4], 0  ;;  %s623_s24 = smov [#allocation5]   ;;  %s505_s28 = scalar_lea.hbm %s757_s1, 256 }
   0x4   :  { %s31_s25 = sshll.u32 %s623_s24, 4  ;;  %p506_p0 = scmp.ne.s32.totalorder %s757_s1, %s505_s28  ;;  %s32_s25 = int_to_ptr.vmem [resolvable:$true] %s31_s25 }
   0x5   :  { %p509_p1 = scmp.lt.u32.totalorder %s505_s28, %s757_s1 }
   0x7   :  { %p511_p2 = pnand %p509_p1, %p506_p0 }
   0x9   :  { %514 = shalt.err (!%p511_p2)
}
   0xa   :  { %s515_s10 = scalar_lea.vmem %s32_s25, 256  ;;  %p520_p4 = scmp.lt.s32.totalorder %s32_s25, %s32_s25 }
   0xb   :  { %p516_p3 = scmp.ne.s32.totalorder %s32_s25, %s515_s10  ;;  %p521_p5 = scmp.lt.s32.totalorder %s515_s10, %s515_s10 }
   0xd   :  { %p522_p6 = por %p521_p5, %p520_p4 }
   0xf   :  { %p523_p7 = pnand %p522_p6, %p516_p3 }
  0x11   :  { %526 = shalt.err (!%p523_p7)
}
  0x12   :  { %s624_s11 = smov 128   ;;  %s625_s12 = smov 8  }
  0x13   :  { %37 = dma.hbm_to_vmem [thread:$0]  %s757_s1, 256, %s32_s25, [#allocation6], %s624_s11, %s624_s11, %s625_s12  }
  0x14   :  { %s626_s15 = smov [#allocation2]   ;;  %s627_s17 = smov [#allocation7]  }
  0x15   :  { %s22_s16 = sshll.u32 %s626_s15, 4  ;;  %s45_s18 = sshll.u32 %s627_s17, 4  ;;  %s23_s16 = int_to_ptr.vmem [resolvable:$true] %s22_s16  ;;  %s46_s18 = int_to_ptr.vmem [resolvable:$true] %s45_s18 }
  0x16   :  { %s527_s21 = scalar_lea.hbm %s756_s0, 128 }
  0x17   :  { %p528_p8 = scmp.ne.s32.totalorder %s756_s0, %s527_s21  ;;  %p531_p9 = scmp.lt.u32.totalorder %s527_s21, %s756_s0 }
  0x19   :  { %p533_p10 = pnand %p531_p9, %p528_p8 }
  0x1b   :  { %536 = shalt.err (!%p533_p10)
}
  0x1c   :  { %s537_s1 = scalar_lea.vmem %s23_s16, 128  ;;  %p542_p12 = scmp.lt.s32.totalorder %s23_s16, %s23_s16 }
  0x1d   :  { %p538_p11 = scmp.ne.s32.totalorder %s23_s16, %s537_s1  ;;  %p543_p13 = scmp.lt.s32.totalorder %s537_s1, %s537_s1 }
  0x1f   :  { %p544_p0 = por %p543_p13, %p542_p12 }
  0x21   :  { %p545_p1 = pnand %p544_p0, %p538_p11 }
  0x23   :  { %548 = shalt.err (!%p545_p1)
}
  0x24   :  { %25 = dma.hbm_to_vmem [thread:$0]  %s756_s0, 128, %s23_s16, [#allocation3]  }
  0x25   :  { %s549_s30 = scalar_lea.hbm %s759_s3, 1024 }
  0x26   :  { %p550_p2 = scmp.ne.s32.totalorder %s759_s3, %s549_s30  ;;  %p553_p3 = scmp.lt.u32.totalorder %s549_s30, %s759_s3 }
  0x28   :  { %p555_p4 = pnand %p553_p3, %p550_p2 }
  0x2a   :  { %558 = shalt.err (!%p555_p4)
}
  0x2b   :  { %s559_s14 = scalar_lea.vmem %s46_s18, 1024  ;;  %p564_p6 = scmp.lt.s32.totalorder %s46_s18, %s46_s18 }
  0x2c   :  { %p560_p5 = scmp.ne.s32.totalorder %s46_s18, %s559_s14  ;;  %p565_p7 = scmp.lt.s32.totalorder %s559_s14, %s559_s14 }
  0x2e   :  { %p566_p8 = por %p565_p7, %p564_p6 }
  0x30   :  { %p567_p9 = pnand %p566_p8, %p560_p5 }
  0x32   :  { %570 = shalt.err (!%p567_p9)
}
  0x33   :  { %51 = dma.hbm_to_vmem [thread:$0]  %s759_s3, 1024, %s46_s18, [#allocation6], %s624_s11, %s624_s11, %s625_s12  }
  0x34   :  { %s628_s16 = smov [#allocation8]   ;;  %s571_s21 = scalar_lea.hbm %s761_s5, 1024 }
  0x35   :  { %s59_s17 = sshll.u32 %s628_s16, 4  ;;  %p572_p10 = scmp.ne.s32.totalorder %s761_s5, %s571_s21  ;;  %s60_s17 = int_to_ptr.vmem [resolvable:$true] %s59_s17 }
  0x36   :  { %p575_p11 = scmp.lt.u32.totalorder %s571_s21, %s761_s5 }
  0x38   :  { %p577_p12 = pnand %p575_p11, %p572_p10 }
  0x3a   :  { %580 = shalt.err (!%p577_p12)
}
  0x3b   :  { %s581_s1 = scalar_lea.vmem %s60_s17, 1024  ;;  %p586_p0 = scmp.lt.s32.totalorder %s60_s17, %s60_s17 }
  0x3c   :  { %p582_p13 = scmp.ne.s32.totalorder %s60_s17, %s581_s1  ;;  %p587_p1 = scmp.lt.s32.totalorder %s581_s1, %s581_s1 }
  0x3e   :  { %p588_p2 = por %p587_p1, %p586_p0 }
  0x40   :  { %p589_p3 = pnand %p588_p2, %p582_p13 }
  0x42   :  { %592 = shalt.err (!%p589_p3)
}
  0x43   :  { %65 = dma.hbm_to_vmem [thread:$0]  %s761_s5, 1024, %s60_s17, [#allocation9], %s624_s11, %s624_s11, %s625_s12  }
  0x44   :  { %615 = dma.done.wait [#allocation3], 128  }
  0x45   :  { %616 = vsyncadd [#allocation3], 4294967168 }
  0x46   :  { %617 = dma.done.wait [#allocation6], 1280  }
  0x47   :  { %618 = vsyncadd [#allocation6], 4294966016 }
  0x48   :  { %619 = dma.done.wait [#allocation9], 1024  }
  0x49   :  { %620 = vsyncadd [#allocation9], 4294966272  ;;  %v629_v0 = vmov 0.0|0.0   ;;  %vm630_vm0 = vmmov 0   ;;  %v631_v1 = vmov 0.0   ;;  %v81_v2 = vld [vmem:[#allocation5] sm:$0xff]  ;;  %v354_v52 = vlaneseq }
  0x4a   :  { %460 = vmatprep.subr.bf16.mxu0 %v629_v0  ;;  %419 = vmatprep.mubr.msk.f32.mxu0 %vm630_vm0, %v631_v1  ;;  %v82_v3 = vld [vmem:[#allocation5 + $0x8] sm:$0xff]  ;;  %v165_v5 = vld [vmem:[#allocation7] sm:$0xff]  ;;  %v166_v6 = vld [vmem:[#allocation7 + $0x8] sm:$0xff]  ;;  %vm90_vm1 = vcmask 130048   ;;  %vm180_vm2 = vcmask 523264   ;;  %s632_s28 = smov 1  }
  0x4b   :  { %463 = vmatprep.subr.bf16.mxu1 %v629_v0  ;;  %438 = vmatprep.mubr.msk.f32.mxu1 %vm630_vm0, %v631_v1  ;;  %v461_v4 = vpack.c.bf16 %v82_v3, %v81_v2  ;;  %v167_v7 = vld [vmem:[#allocation7 + $0x10] sm:$0xff]  ;;  %v464_v8 = vpack.c.bf16 %v166_v6, %v165_v5  ;;  %v168_v9 = vld [vmem:[#allocation7 + $0x18] sm:$0xff]  ;;  %v80_v10 = vld [vmem:[#allocation2] sm:$0xff]  ;;  %v633_v44 = vmov 6   ;;  %v355_v53 = vand.u32 127, %v354_v52 }
  0x4c   :  { %v467_v11 = vpack.c.bf16 %v168_v9, %v167_v7  ;;  %v169_v12 = vld [vmem:[#allocation7 + $0x20] sm:$0xff]  ;;  %v170_v13 = vld [vmem:[#allocation7 + $0x28] sm:$0xff]  ;;  %v171_v15 = vld [vmem:[#allocation7 + $0x30] sm:$0xff]  ;;  %500 = vset.pattern.permute.xlu1 %v633_v44  ;;  %499 = vset.pattern.permute.xlu0 %v633_v44 }
  0x4d   :  { %462 = vmatpush3.bf16.msra.mxu0 %v461_v4  ;;  %465 = vmatpush3.bf16.msra.mxu1 %v464_v8  ;;  %v470_v14 = vpack.c.bf16 %v170_v13, %v169_v12  ;;  %v172_v16 = vld [vmem:[#allocation7 + $0x38] sm:$0xff]  ;;  %v255_v18 = vld [vmem:[#allocation8] sm:$0xff]  ;;  %v256_v19 = vld [vmem:[#allocation8 + $0x8] sm:$0xff]  ;;  %vm357_vm3 = vcmp.eq.s32.totalorder %v355_v53, 6  ;;  %vm356_vm4 = vcmp.eq.s32.totalorder %v355_v53, 5 }
  0x4e   :  { %475 = vmatprep.subr.bf16.mxu0 %v629_v0  ;;  %466 = vmatprep.subr.bf16.mxu1 %v629_v0  ;;  %v473_v17 = vpack.c.bf16 %v172_v16, %v171_v15  ;;  %v257_v20 = vld [vmem:[#allocation8 + $0x10] sm:$0xff]  ;;  %v476_v21 = vpack.c.bf16 %v256_v19, %v255_v18  ;;  %v258_v22 = vld [vmem:[#allocation8 + $0x18] sm:$0xff]  ;;  %v259_v24 = vld [vmem:[#allocation8 + $0x20] sm:$0xff] }
  0x4f   :  { %v479_v23 = vpack.c.bf16 %v258_v22, %v257_v20  ;;  %v260_v25 = vld [vmem:[#allocation8 + $0x28] sm:$0xff]  ;;  %v261_v32 = vld [vmem:[#allocation8 + $0x30] sm:$0xff]  ;;  %v262_v33 = vld [vmem:[#allocation8 + $0x38] sm:$0xff] }
  0x50   :  { %420 = vmatmul.mubr.msk.f32.vlgmr.msra.gmra.mrb[0].mxu0 %vm90_vm1, %v80_v10  ;;  %v482_v26 = vpack.c.bf16 %v260_v25, %v259_v24  ;;  %v388_v27 = vld [vmem:[%s758_s2] ss:$0 sm:$0xff]  ;;  %v485_v34 = vpack.c.bf16 %v262_v33, %v261_v32 }
  0x51   :  { %457 = vmatprep.mubr.msk.f32.mxu0 %vm630_vm0, %v631_v1  ;;  %468 = vmatpush3.bf16.msra.mxu1 %v467_v11  ;;  %v390_v35 = vld [vmem:[%s760_s4] ss:$0 sm:$0xff]  ;;  %s634_s4 = smov [#allocation10]  }
  0x52   :  { %469 = vmatprep.subr.bf16.mxu1 %v629_v0  ;;  %477 = vmatpush3.bf16.msra.mxu0 %v476_v21  ;;  %v392_v40 = vld [vmem:[%s762_s6] ss:$0 sm:$0xff]  ;;  %s377_s6 = sshll.u32 %s634_s4, 4  ;;  %s378_s6 = int_to_ptr.vmem [resolvable:$true] %s377_s6 }
  0x53   :  { %478 = vmatprep.subr.bf16.mxu0 %v629_v0  ;;  %s593_s29 = scalar_lea.vmem %s378_s6, 128  ;;  %p598_p5 = scmp.lt.s32.totalorder %s378_s6, %s378_s6 }
  0x54   :  { %p594_p4 = scmp.ne.s32.totalorder %s378_s6, %s593_s29  ;;  %p599_p6 = scmp.lt.s32.totalorder %s593_s29, %s593_s29 }
  0x55   :  { %471 = vmatpush3.bf16.msra.mxu1 %v470_v14 }
  0x56   :  { %472 = vmatprep.subr.bf16.mxu1 %v629_v0  ;;  %480 = vmatpush3.bf16.msra.mxu0 %v479_v23  ;;  %p600_p7 = por %p599_p6, %p598_p5 }
  0x57   :  { %481 = vmatprep.subr.bf16.mxu0 %v629_v0 }
  0x58   :  { %p601_p8 = pnand %p600_p7, %p594_p4 }
  0x59   :  { %474 = vmatpush3.bf16.msra.mxu1 %v473_v17 }
  0x5a   :  { %483 = vmatpush3.bf16.msra.mxu0 %v482_v26 }
  0x5b   :  { %484 = vmatprep.subr.bf16.mxu0 %v629_v0 }
  0x5e   :  { %486 = vmatpush3.bf16.msra.mxu0 %v485_v34 }
 0x123   :  { %v160_v28 = vpop.f32.mrb[0].mxu0 }
 0x124   :  { %v161_v29 = vadd.f32 %v388_v27, %v160_v28  ;;  %v421_v30 = vpop.f32.mrb[1].mxu0 }
 0x126   :  { %v164_v31 = vmax.f32 %v161_v29, 0.0 }
 0x128   :  { %439 = vmatmul.mubr.msk.f32.vlgmr.msra.gmra.mrb[0].mxu1 %vm180_vm2, %v164_v31 }
 0x1fb   :  { %v250_v36 = vpop.f32.mrb[0].mxu1 }
 0x1fc   :  { %v251_v37 = vadd.f32 %v390_v35, %v250_v36  ;;  %v440_v38 = vpop.f32.mrb[1].mxu1 }
 0x1fe   :  { %v254_v39 = vmax.f32 %v251_v37, 0.0 }
 0x200   :  { %458 = vmatmul.mubr.msk.f32.vlgmr.msra.gmra.mrb[2].mxu0 %vm180_vm2, %v254_v39 }
 0x2d3   :  { %v339_v41 = vpop.f32.mrb[2].mxu0 }
 0x2d4   :  { %v340_v42 = vadd.f32 %v392_v40, %v339_v41  ;;  %v459_v43 = vpop.f32.mrb[3].mxu0 }
 0x2d6   :  { %344 = vrot.lane.b32.xlu0 %v340_v42, %s632_s28 }
 0x348   :  { %v345_v45 = vpop.permute.xlu0 %344 }
 0x349   :  { %v347_v46 = vsub.f32 %v340_v42, %v345_v45 }
 0x34b   :  { %v348_v47 = vmul.f32 1.442695, %v347_v46 }
 0x34d   :  { %501 = vpow2.f32 %v348_v47 }
 0x357   :  { %v502_v48 = vpop.eup %501 }
 0x358   :  { %v350_v49 = vadd.f32 1.0, %v502_v48 }
 0x35a   :  { %503 = vrcp.f32 %v350_v49 }
 0x364   :  { %v504_v50 = vpop.eup %503 }
 0x365   :  { %366 = vperm.xlu1 %500, %v504_v50   ;;  %v353_v51 = vsub.f32 1.0, %v504_v50 }
 0x367   :  { %360 = vperm.xlu0 %499, %v353_v51  }
 0x3e4   :  { %v367_v55 = vpop.permute.xlu1 %366 }
 0x3e6   :  { %v361_v54 = vpop.permute.xlu0 %360 }
 0x3e7   :  { %v363_v56 = vsel %vm357_vm3, %v361_v54, %v340_v42 }
 0x3e8   :  { %v369_v57 = vsel %vm356_vm4, %v367_v55, %v363_v56 }
 0x3e9   :  { %370 = vst [vmem:[#allocation10] sm:$0xff] %v369_v57 }
 0x3ea   :  { %604 = shalt.err (!%p601_p8)
}
 0x3eb   :  { %s605_s9 = scalar_lea.hbm %s763_s7, 128 }
 0x3ec   :  { %p606_p9 = scmp.ne.s32.totalorder %s763_s7, %s605_s9  ;;  %p609_p10 = scmp.lt.u32.totalorder %s605_s9, %s763_s7 }
 0x3ee   :  { %p611_p11 = pnand %p609_p10, %p606_p9 }
 0x3f0   :  { %614 = shalt.err (!%p611_p11)
}
 0x3f1   :  { %380 = dma.vmem_to_hbm [thread:$0]  %s378_s6, 128, %s763_s7, [#allocation4]  }
 0x3f2   :  { %621 = dma.done.wait [#allocation4], 128  }
 0x3f3   :  { %622 = vsyncadd [#allocation4], 4294967168 }
 0x3f4   :  { %384 = vsyncpa [#allocation3], 1 }
 0x3f5   :  { %385 = vsyncpa [#allocation6], 1 }
 0x3f6   :  { %386 = vsyncpa [#allocation9], 1 }
 0x3f7   :  { %387 = vsyncpa [#allocation4], 1 }

</bundles_post_ra>
